<compile_context>
chip_gen: v7x
topology: tpu7x:2x2x1
jax: 0.10.0
libtpu: 0.0.40
codegen_flags: <defaults>
</compile_context>

<pallas_src>
import random

import jax
import jax.numpy as jnp
import numpy as np
from jax.experimental import pallas as pl
from jax.experimental.pallas import tpu as pltpu


# ---------------------------------------------------------------------------
# Pallas kernel: out[i,j] = (sum_k mask[i,k] * embed[k,j]) / max(count[i], 1)
# ---------------------------------------------------------------------------
def mean_agg_kernel(mask_ref, embed_ref, cnt_ref, out_ref):
    k = pl.program_id(2)

    @pl.when(k == 0)
    def _init():
        out_ref[...] = jnp.zeros_like(out_ref)

    # bf16 x bf16 -> f32 accumulate on the MXU, directly into the resident
    # output block (its index_map ignores k).
    out_ref[...] += jnp.dot(mask_ref[...], embed_ref[...],
                            preferred_element_type=jnp.float32)

    @pl.when(k == pl.num_programs(2) - 1)
    def _finalize():
        cnt = jnp.maximum(cnt_ref[...], 1.0)          # [tm, 1], guard 0/0
        inv = pl.reciprocal(cnt, approx=True)         # EUP slot, ~free
        out_ref[...] = out_ref[...] * inv


def _round_up(x, m):
    return ((x + m - 1) // m) * m


def _pick_tile(dim, target, align):
    """Largest tile <= target (multiple of `align`) s.t. tile evenly divides
    the (returned) padded dim, using the fewest grid steps."""
    dim_al = _round_up(max(dim, align), align)
    steps = -(-dim_al // target)                  # ceil
    tile = _round_up(-(-dim_al // steps), align)  # ceil, then align
    return tile, tile * steps


def mean_aggregate(mask, embed, counts):
    """Mean neighbor aggregation.

    mask:   [B, U] float (0/1 membership; exact in bf16)
    embed:  [U, D] float (gathered unique-node embeddings)
    counts: [B, 1] float (neighbors per row, i.e. mask.sum(1))
    returns [B, D] float32 == (mask / max(counts,1)) @ embed
    """
    B, U = mask.shape
    U2, D = embed.shape
    assert U == U2 and counts.shape == (B, 1)

    # ----- tile selection (big tiles; fewest grid steps; MXU-friendly) -----
    tm, B_pad = _pick_tile(B, 256, 16)      # sublane-aligned rows
    tn, D_pad = _pick_tile(D, 512, 128)     # lane-dense output (tn == D here)
    tk, U_pad = _pick_tile(U, 2048, 128)    # big K chunks: amortize step cost

    # Keep >=2 parallel tiles for 2-TensorCore chips (v7x) when possible.
    if (B_pad // tm) * (D_pad // tn) < 2 and tn >= 256 and (tn // 2) % 128 == 0:
        tn //= 2

    grid = (B_pad // tm, D_pad // tn, U_pad // tk)   # K (reduction) axis last

    # ----- zero-pad + low-precision input streams -----
    mask_p = jnp.pad(jnp.asarray(mask, jnp.float32),
                     ((0, B_pad - B), (0, U_pad - U))).astype(jnp.bfloat16)
    embed_p = jnp.pad(jnp.asarray(embed, jnp.float32),
                      ((0, U_pad - U), (0, D_pad - D))).astype(jnp.bfloat16)
    counts_p = jnp.pad(jnp.asarray(counts, jnp.float32),
                       ((0, B_pad - B), (0, 0)))

    # ----- VMEM budget: double-buffered inputs + resident f32 output -----
    tile_bytes = (2 * tm * tk * 2 +        # mask tiles (bf16, x2 buffers)
                  2 * tk * tn * 2 +        # embed tiles (bf16, x2 buffers)
                  2 * tm * tn * 4 +        # f32 output block (x2 buffers)
                  2 * tm * 4)              # counts
    vmem_limit = int(min(max(2 * tile_bytes, 32 * 1024 * 1024),
                         48 * 1024 * 1024))   # <= 48 MiB: safe on v7x's 64 MiB

    out_pad = pl.pallas_call(
        mean_agg_kernel,
        out_shape=jax.ShapeDtypeStruct((B_pad, D_pad), jnp.float32),
        grid_spec=pltpu.PrefetchScalarGridSpec(
            num_scalar_prefetch=0,
            grid=grid,
            in_specs=[
                pl.BlockSpec((tm, tk), lambda i, j, k: (i, k)),   # mask tile
                pl.BlockSpec((tk, tn), lambda i, j, k: (k, j)),   # embed tile
                pl.BlockSpec((tm, 1), lambda i, j, k: (i, 0)),    # row counts
            ],
            out_specs=pl.BlockSpec((tm, tn), lambda i, j, k: (i, j)),
        ),
        compiler_params=pltpu.CompilerParams(
            dimension_semantics=("parallel", "parallel", "arbitrary"),
            vmem_limit_bytes=vmem_limit,
        ),
    )(mask_p, embed_p, counts_p)

    return out_pad[:B, :D]


# ---------------------------------------------------------------------------
# Host-side graph preprocessing (mirrors the Python part of the module).
# TODO(synk): neighbor sampling / set-union / dense-mask construction is
# irregular Python-set work with no Pallas equivalent; it stays on the host.
# ---------------------------------------------------------------------------
def build_mask_and_unique_nodes(nodes, to_neighs, num_sample=10, gcn=False):
    _set = set
    if num_sample is not None:
        _sample = random.sample
        samp_neighs = [
            _set(_sample(sorted(to_neigh), num_sample))
            if len(to_neigh) >= num_sample else to_neigh
            for to_neigh in to_neighs
        ]
    else:
        samp_neighs = to_neighs
    if gcn:
        samp_neighs = [samp_neigh | {nodes[i]}
                       for i, samp_neigh in enumerate(samp_neighs)]
    unique_nodes_list = list(set.union(*samp_neighs))
    unique_nodes = {n: i for i, n in enumerate(unique_nodes_list)}
    mask = np.zeros((len(samp_neighs), len(unique_nodes)), dtype=np.float32)
    column_indices = [unique_nodes[n] for samp_neigh in samp_neighs
                      for n in samp_neigh]
    row_indices = [i for i in range(len(samp_neighs))
                   for _ in range(len(samp_neighs[i]))]
    mask[row_indices, column_indices] = 1.0
    return mask, unique_nodes_list


if __name__ == "__main__":
    # Deterministic synthetic graph + embedding table (small shapes).
    random.seed(0)
    num_total_nodes = 40
    feat_dim = 256
    batch = 8
    num_sample = 10

    key = jax.random.PRNGKey(0)
    embed_table = jax.random.normal(key, (num_total_nodes, feat_dim),
                                    dtype=jnp.float32)

    nodes = list(range(batch))
    to_neighs = []
    for n in nodes:
        deg = random.randint(5, 15)
        neighs = set(random.sample(range(num_total_nodes), deg))
        neighs.discard(n)
        if not neighs:
            neighs = {(n + 1) % num_total_nodes}
        to_neighs.append(neighs)

    # Host-side preprocessing (Python part of MeanAggregator.forward).
    mask_np, unique_nodes_list = build_mask_and_unique_nodes(
        nodes, to_neighs, num_sample=num_sample, gcn=False)
    counts_np = mask_np.sum(axis=1, keepdims=True)            # len(samp_neigh)

    # features(LongTensor(unique_nodes_list)) -> row gather (plain-JAX glue).
    embed_matrix = embed_table[jnp.asarray(unique_nodes_list, dtype=jnp.int32)]

    # Kernel call (padding / tiling / dtype handling inside the wrapper).
    to_feats = mean_aggregate(mask_np, embed_matrix, counts_np)
    to_feats = jax.block_until_ready(to_feats)

    # Reference with the same bf16-cast input streams (f32 math).
    mask_bf = jnp.asarray(mask_np, jnp.bfloat16).astype(jnp.float32)
    embed_bf = embed_matrix.astype(jnp.bfloat16).astype(jnp.float32)
    ref = (mask_bf @ embed_bf) / jnp.maximum(jnp.asarray(counts_np), 1.0)

    assert to_feats.shape == (batch, feat_dim)
    assert jnp.allclose(to_feats, ref, atol=2e-2, rtol=2e-2)

    print("KERNEL_OK")
</pallas_src>

<mosaic_0001>
module attributes {stable_mosaic.version = 11 : i64} {
  func.func @mean_agg_kernel(%arg0: i32, %arg1: i32, %arg2: i32, %arg3: memref<16x128xbf16, #tpu.memory_space<vmem>>, %arg4: memref<128x128xbf16, #tpu.memory_space<vmem>>, %arg5: memref<16x1xf32, #tpu.memory_space<vmem>>, %arg6: memref<16x128xf32, #tpu.memory_space<vmem>>) attributes {dimension_semantics = [#tpu.dimension_semantics<parallel>, #tpu.dimension_semantics<parallel>, #tpu.dimension_semantics<arbitrary>], iteration_bounds = array<i64: 1, 2, 1>, scalar_prefetch = 0 : i64, scratch_operands = 0 : i64, tpu.core_type = #tpu.core_type<tc>, window_params = [{transform_indices = @transform_0, window_bounds = array<i64: 16, 128>}, {transform_indices = @transform_1, window_bounds = array<i64: 128, 128>}, {transform_indices = @transform_2, window_bounds = array<i64: 16, 1>}, {transform_indices = @transform_3, window_bounds = array<i64: 16, 128>}]} {
    %c0_i32 = arith.constant 0 : i32
    %0 = arith.cmpi eq, %arg2, %c0_i32 : i32
    %1 = arith.extui %0 : i1 to i32
    %c0_i32_0 = arith.constant 0 : i32
    %2 = arith.cmpi ne, %1, %c0_i32_0 : i32
    scf.if %2 {
      %cst_10 = arith.constant 0.000000e+00 : f32
      %12 = vector.broadcast %cst_10 : f32 to vector<16x128xf32>
      %c0_11 = arith.constant 0 : index
      %c0_12 = arith.constant 0 : index
      %13 = vector.load %arg6[%c0_11, %c0_12] : memref<16x128xf32, #tpu.memory_space<vmem>>, vector<16x128xf32>
      tpu.vector_store %arg6[%c0_11, %c0_12], %12 {strides = array<i32>} : memref<16x128xf32, #tpu.memory_space<vmem>>, vector<16x128xf32>,
    } else {
    }
    %c0 = arith.constant 0 : index
    %c0_1 = arith.constant 0 : index
    %3 = vector.load %arg6[%c0, %c0_1] : memref<16x128xf32, #tpu.memory_space<vmem>>, vector<16x128xf32>
    %c0_2 = arith.constant 0 : index
    %c0_3 = arith.constant 0 : index
    %4 = vector.load %arg3[%c0_2, %c0_3] : memref<16x128xbf16, #tpu.memory_space<vmem>>, vector<16x128xbf16>
    %c0_4 = arith.constant 0 : index
    %c0_5 = arith.constant 0 : index
    %5 = vector.load %arg4[%c0_4, %c0_5] : memref<128x128xbf16, #tpu.memory_space<vmem>>, vector<128x128xbf16>
    %cst = arith.constant dense<0.000000e+00> : vector<16x128xf32>
    %6 = tpu.matmul %4, %5, %cst {dimension_numbers = #tpu.dot_dimension_numbers<[1], [0], [0], [1], [0, 0, 1, 1], [], []>} : vector<16x128xbf16>, vector<128x128xbf16>, vector<16x128xf32> -> vector<16x128xf32>
    %7 = arith.addf %3, %6 : vector<16x128xf32>
    %c0_6 = arith.constant 0 : index
    %c0_7 = arith.constant 0 : index
    %8 = vector.load %arg6[%c0_6, %c0_7] : memref<16x128xf32, #tpu.memory_space<vmem>>, vector<16x128xf32>
    tpu.vector_store %arg6[%c0_6, %c0_7], %7 {strides = array<i32>} : memref<16x128xf32, #tpu.memory_space<vmem>>, vector<16x128xf32>,
    %c0_i32_8 = arith.constant 0 : i32
    %9 = arith.cmpi eq, %arg2, %c0_i32_8 : i32
    %10 = arith.extui %9 : i1 to i32
    %c0_i32_9 = arith.constant 0 : i32
    %11 = arith.cmpi ne, %10, %c0_i32_9 : i32
    scf.if %11 {
      %c0_10 = arith.constant 0 : index
      %c0_11 = arith.constant 0 : index
      %12 = vector.load %arg5[%c0_10, %c0_11] : memref<16x1xf32, #tpu.memory_space<vmem>>, vector<16x1xf32>
      %cst_12 = arith.constant 1.000000e+00 : f32
      %13 = vector.broadcast %cst_12 : f32 to vector<16x1xf32>
      %14 = arith.maximumf %12, %13 : vector<16x1xf32>
      %15 = tpu.reciprocal %14 {approx = true} : vector<16x1xf32> -> vector<16x1xf32>
      %c0_13 = arith.constant 0 : index
      %c0_14 = arith.constant 0 : index
      %16 = vector.load %arg6[%c0_13, %c0_14] : memref<16x128xf32, #tpu.memory_space<vmem>>, vector<16x128xf32>
      %17 = vector.broadcast %15 : vector<16x1xf32> to vector<16x128xf32>
      %18 = arith.mulf %16, %17 : vector<16x128xf32>
      %c0_15 = arith.constant 0 : index
      %c0_16 = arith.constant 0 : index
      %19 = vector.load %arg6[%c0_15, %c0_16] : memref<16x128xf32, #tpu.memory_space<vmem>>, vector<16x128xf32>
      tpu.vector_store %arg6[%c0_15, %c0_16], %18 {strides = array<i32>} : memref<16x128xf32, #tpu.memory_space<vmem>>, vector<16x128xf32>,
    } else {
    }
    return
  }
  func.func @transform_0(%arg0: i32, %arg1: i32, %arg2: i32) -> (i32, i32) {
    %c0_i32 = arith.constant 0 : i32
    return %arg0, %arg2 : i32, i32
  }
  func.func @transform_1(%arg0: i32, %arg1: i32, %arg2: i32) -> (i32, i32) {
    %c0_i32 = arith.constant 0 : i32
    return %arg2, %arg1 : i32, i32
  }
  func.func @transform_2(%arg0: i32, %arg1: i32, %arg2: i32) -> (i32, i32) {
    %c0_i32 = arith.constant 0 : i32
    %c0_i32_0 = arith.constant 0 : i32
    return %arg0, %c0_i32 : i32, i32
  }
  func.func @transform_3(%arg0: i32, %arg1: i32, %arg2: i32) -> (i32, i32) {
    %c0_i32 = arith.constant 0 : i32
    return %arg0, %arg1 : i32, i32
  }
}

</mosaic_0001>

<bundles_post_ra>
// kernel: tpu_custom_call.1
= control target key start
LH: loop header
LB: loop body
LE: loop exit
PB: predicated region body
PF: predicated region fallthrough
CT: control target
= control target key end

     0   :  { %8 = vsyncpa [#allocation3], 0  ;;  %s1035_s0 = inlined_call_operand.vmem [shape: bf16[16,128], index: 0, kind: input, shape index: {}]   ;;  %s1036_s1 = inlined_call_operand.hbm [shape: bf16[128,256], index: 1, kind: input, shape index: {}]   ;;  %s1037_s2 = inlined_call_operand.vmem [shape: f32[16,1], index: 2, kind: input, shape index: {}]   ;;  %s1038_s3 = inlined_call_operand.hbm [shape: f32[16,256], index: 3, kind: output, shape index: {}]  }
   0x1   :  { %10 = vsyncpa [#allocation3 + $0x1], 0 }
   0x2   :  { %11 = vsyncpa [#allocation4], 0 }
   0x3   :  { %13 = vsyncpa [#allocation4 + $0x1], 0  ;;  %s842_s12 = smov 0   ;;  %s844_s13 = smov 0  }
   0x4   :  { %s846_s14 = smov 0   ;;  %s848_s15 = smov 0  }
   0x5   :  { %s850_s16 = smov 0   ;;  %s852_s17 = smov 0  }
   0x6 LB: > { %s559_s18 = sadd.s32 4294967295, %s809_s17   ;;  %s560_s19 = sadd.s32 4294967294, %s809_s17   ;;  %s809_s17 = sphi %s852_s17, %s19_s17   ;;  %s805_s16 = sphi %s850_s16, %s1052_s16   ;;  %s801_s15 = sphi %s848_s15, %s1051_s15   ;;  %s797_s14 = sphi %s846_s14, %s1050_s14   ;;  %s793_s13 = sphi %s844_s13, %s1049_s13   ;;  %s789_s12 = sphi %s842_s12, %s1048_s12  }
   0x7   : > { %s34_s20 = sadd.s32 1, %s805_s16  ;;  %s75_s21 = sadd.s32 1, %s797_s14 }
   0x8   : > { %p36_p0 = scmp.ge.s32.totalorder %s34_s20, 2  ;;  %p82_p1 = scmp.ne.s32.totalorder %s797_s14, %s793_s13 }
   0x9   : > { %p83_p2 = scmp.eq.s32.totalorder %s809_s17, 0  ;;  %p88_p3 = scmp.ne.s32.totalorder %s793_s13, %s789_s12 }
   0xa   : > { %s1054_s20 = smov (%p36_p0, %s34_s20), 0  ;;  %p89_p5 = scmp.eq.s32.totalorder %s559_s18, 0 }
   0xb   : > { %p883_p4 = por %p83_p2, %p82_p1  ;;  %s71_s23 = ssub.s32 %s805_s16, %s1054_s20 }
   0xc   : > { %p140_p6 = scmp.eq.s32.totalorder %s559_s18, 1  ;;  %p73_p7 = scmp.eq.s32.totalorder %s71_s23, 0 }
   0xd   : > { %p889_p8 = por %p89_p5, %p88_p3  ;;  %p146_p10 = scmp.eq.s32.totalorder %s560_s19, 1 }
   0xe   : > { %p893_p9 = por %p140_p6, %p82_p1  ;;  %p624_p13 = scmp.lt.s32.totalorder %s809_s17, 2 }
   0xf   : > { %s898_s26 = scalar_select %p73_p7, %s797_s14, %s75_s21  }
  0x10   : > { %s1042_s25 = scalar_select %p893_p9, 1, 0 }
  0x11   : > { %p900_p11 = por %p146_p10, %p88_p3  ;;  %s187_s28 = sand.u32 1, %s797_s14  }
  0x12   : > { %s565_s29 = sshll.u32 %s187_s28, 6  ;;  %s566_s30 = sshll.u32 %s805_s16, 6 }
  0x13   : > { %s1043_s27 = scalar_select %p900_p11, 1, 0 }
  0x14   : > { %s911_s6 = scalar_lea.hbm %s1036_s1, %s566_s30  ;;  %s191_s7 = scalar_lea.vmem [#allocation2], %s565_s29 }
  0x15   : > { %s200_s8 = sshll.u32 %s191_s7, 4  ;;  %p917_p0 = pnand %p624_p13, %p883_p4  ;;  %s913_s8 = int_to_ptr.vmem [resolvable:$true] %s200_s8 }
  0x16   : > { %s921_s10 = scalar_lea.sflag [#allocation3], %s187_s28  ;;  %s697_s11 = scalar_lea.hbm %s911_s6, 1024 }
  0x17   : > { %p698_p1 = scmp.ne.s32.totalorder %s911_s6, %s697_s11  ;;  %p699_p2 = pneg %p917_p0 }
  0x18   : > { %s702_s21 = scalar_lea.hbm %s1036_s1, 2048  ;;  %p703_p4 = scmp.lt.u32.totalorder %s911_s6, %s1036_s1 }
  0x19   : > { %p700_p3 = pnand %p699_p2, %p698_p1  ;;  %p704_p6 = scmp.lt.u32.totalorder %s702_s21, %s697_s11 }
  0x1a   : > { %p706_p10 = scmp.lt.u32.totalorder %s697_s11, %s911_s6 }
  0x1b   : > { %p701_p5 = pneg %p700_p3  ;;  %p705_p7 = por %p704_p6, %p703_p4 }
  0x1d   : > { %p707_p13 = por %p706_p10, %p705_p7 }
  0x1f   : > { %p708_p12 = pnand %p707_p13, %p701_p5 }
  0x21   : > { %711 = shalt.err (!%p708_p12)
}
  0x22   : > { %s712_s28 = scalar_lea.vmem %s913_s8, 1024  ;;  %s811_s29 = smov [#allocation2]  }
  0x23   : > { %p713_p1 = scmp.ne.s32.totalorder %s913_s8, %s712_s28  ;;  %s717_s30 = sshll.u32 %s811_s29, 4  ;;  %s718_s30 = int_to_ptr.vmem [resolvable:$false] %s717_s30 }
  0x24   : > { %s719_s4 = scalar_lea.vmem %s718_s30, 2048  ;;  %p720_p9 = scmp.lt.s32.totalorder %s913_s8, %s718_s30 }
  0x25   : > { %p715_p3 = pnand %p713_p1, %p699_p2  ;;  %p721_p4 = scmp.lt.s32.totalorder %s719_s4, %s712_s28 }
  0x27   : > { %p716_p11 = pneg %p715_p3  ;;  %p722_p6 = por %p721_p4, %p720_p9 }
  0x29   : > { %p723_p7 = pnand %p722_p6, %p716_p11 }
  0x2b   : > { %726 = shalt.err (!%p723_p7)
}
  0x2c   : > { %s812_s5 = smov 128   ;;  %s813_s7 = smov 64  }
  0x2d   : > { %s814_s11 = smov 4   ;;  %p567_p12 = scmp.ge.s32.totalorder %s809_s17, 1 }
  0x2e   : > { %619 = dma.hbm_to_vmem [thread:$0]  (!%p917_p0), %s911_s6, 1024, %s913_s8, %s921_s10, %s812_s5, %s813_s7, %s814_s11  }
  0x2f   : > { %p208_p2 = scmp.lt.s32.totalorder %s809_s17, 3 }
  0x31   : > { %p209_p5 = pnand %p567_p12, %p208_p2 }
  0x32   : > { %s952_s18 = sand.u32 (!%p209_p5), 1, %s793_s13  }
  0x33   : > { %212 = sbr.rel (%p209_p5) target bundleno = 324 (0x144), region = 32  ;;  %s568_s19 = sshll.u32 (!%p209_p5), %s952_s18, 6 }
  0x34   : > { %s215_s21 = scalar_lea.sflag (!%p209_p5), [#allocation3], %s952_s18  ;;  %s956_s22 = scalar_lea.vmem (!%p209_p5), [#allocation2], %s568_s19 }
  0x3a   : > { %780 = dma.done.wait (%p889_p8), %s215_s21, 1024  }
  0x3b   : > { %782 = vsyncadd (%p889_p8), %s215_s21, 4294966272  ;;  %v815_v0 = vmov 0.0   ;;  %vm816_vm0 = vmmov 0   ;;  %v817_v1 = vmov 0   ;;  %v684_v2 = vld [vmem:[%s956_s22] sm:$0xff]   ;;  %v685_v3 = vld [vmem:[%s956_s22 + $0x8] sm:$0xff]  }
  0x3c   : > { %592 = vmatprep.subr.bf16.mxu0 %v815_v0  ;;  %608 = vmatprep.mubr.msk.bf16.mxu0 %vm816_vm0, %v815_v0  ;;  %v686_v4 = vld [vmem:[%s956_s22 + $0x10] sm:$0xff]   ;;  %v400_v5 = vld [vmem:[%s1037_s2] sm:$0xff]  ;;  %v401_v6 = vld [vmem:[%s1037_s2 + $0x8] sm:$0xff]  ;;  %s569_s28 = sshll.u32 %s952_s18, 4  ;;  %s580_s29 = sshll.u32 %s801_s15, 7 }
  0x3d   : > { %683 = vset.pattern.permute.xlu0 %v817_v1  ;;  %593 = vmatpush3.bf16.msra.mxu0 %v684_v2  ;;  %v687_v7 = vld [vmem:[%s956_s22 + $0x18] sm:$0xff]   ;;  %v402_v8 = vmax.f32 %v400_v5, 1.0  ;;  %v403_v9 = vmax.f32 %v401_v6, 1.0  ;;  %v688_v10 = vld [vmem:[%s956_s22 + $0x20] sm:$0xff]   ;;  %v689_v11 = vld [vmem:[%s956_s22 + $0x28] sm:$0xff]   ;;  %s253_s30 = scalar_lea.vmem [#allocation5], %s569_s28  ;;  %s984_s11 = scalar_lea.hbm %s1038_s3, %s580_s29 }
  0x3e   : > { %594 = vmatprep.subr.bf16.mxu0 %v815_v0  ;;  %v690_v13 = vld [vmem:[%s956_s22 + $0x30] sm:$0xff]   ;;  %v691_v15 = vld [vmem:[%s956_s22 + $0x38] sm:$0xff]   ;;  %v692_v16 = vld [vmem:[%s1035_s0] sm:$0xff]   ;;  %s438_s4 = sshll.u32 %s253_s30, 4  ;;  %s423_s15 = scalar_lea.sflag [#allocation4], %s952_s18  ;;  %s986_s4 = int_to_ptr.vmem [resolvable:$true] %s438_s4 }
  0x3f   : > { %693 = vrcp.f32 %v402_v8  ;;  %s727_s19 = scalar_lea.vmem %s986_s4, 256  ;;  %p1045_p9 = scmp.ne.s32.totalorder %s1042_s25, 0 }
  0x40   : > { %695 = vrcp.f32 %v403_v9  ;;  %p728_p8 = scmp.ne.s32.totalorder %s986_s4, %s727_s19  ;;  %s818_s21 = smov [#allocation5]  }
  0x41   : > { %595 = vmatpush3.bf16.msra.mxu0 %v685_v3  ;;  %s731_s22 = sshll.u32 %s818_s21, 4  ;;  %s732_s22 = int_to_ptr.vmem [resolvable:$false] %s731_s22 }
  0x42   : > { %596 = vmatprep.subr.bf16.mxu0 %v815_v0  ;;  %p729_p11 = pnand %p728_p8, %p1045_p9  ;;  %s733_s24 = scalar_lea.vmem %s732_s22, 512 }
  0x43   : > { %p734_p10 = scmp.lt.s32.totalorder %s986_s4, %s732_s22  ;;  %p735_p13 = scmp.lt.s32.totalorder %s733_s24, %s727_s19 }
  0x44   : > { %p730_p0 = pneg %p729_p11 }
  0x45   : > { %597 = vmatpush3.bf16.msra.mxu0 %v686_v4  ;;  %p736_p1 = por %p735_p13, %p734_p10 }
  0x46   : > { %598 = vmatprep.subr.bf16.mxu0 %v815_v0 }
  0x47   : > { %p737_p3 = pnand %p736_p1, %p730_p0 }
  0x49   : > { %599 = vmatpush3.bf16.msra.mxu0 %v687_v7  ;;  %v694_v12 = vpop.eup %693 }
  0x4a   : > { %600 = vmatprep.subr.bf16.mxu0 %v815_v0  ;;  %410 = vperm.xlu0 %683, %v694_v12   ;;  %v696_v14 = vpop.eup %695 }
  0x4d   : > { %601 = vmatpush3.bf16.msra.mxu0 %v688_v10 }
  0x4e   : > { %602 = vmatprep.subr.bf16.mxu0 %v815_v0  ;;  %415 = vperm.xlu0 %683, %v696_v14  }
  0x51   : > { %603 = vmatpush3.bf16.msra.mxu0 %v689_v11 }
  0x52   : > { %604 = vmatprep.subr.bf16.mxu0 %v815_v0 }
  0x55   : > { %605 = vmatpush3.bf16.msra.mxu0 %v690_v13 }
  0x56   : > { %606 = vmatprep.subr.bf16.mxu0 %v815_v0 }
  0x59   : > { %607 = vmatpush3.bf16.msra.mxu0 %v691_v15 }
  0x5c   : > { %609 = vmatmul.mubr.bf16.vlgmr.msra.gmra.mrb[0].mxu0 %v692_v16 }
  0xc9   : > { %v411_v17 = vpop.permute.xlu0 %410 }
  0xcd   : > { %v416_v23 = vpop.permute.xlu0 %415 }
 0x12f   : > { %v386_v18 = vpop.f32.mrb[0].mxu0 }
 0x130   : > { %v610_v19 = vpop.f32.mrb[1].mxu0  ;;  %v418_v22 = vmul.f32 %v411_v17, %v386_v18 }
 0x131   : > { %v389_v20 = vpop.f32.mrb[2].mxu0 }
 0x132   : > { %v611_v21 = vpop.f32.mrb[3].mxu0  ;;  %420 = vst [vmem:[%s253_s30] sm:$0xff] %v418_v22  ;;  %v419_v24 = vmul.f32 %v416_v23, %v389_v20 }
 0x134   : > { %421 = vst [vmem:[%s253_s30 + $0x8] sm:$0xff] %v419_v24 }
 0x135   : > { %740 = shalt.err (!%p737_p3)
}
 0x136   : > { %s741_s6 = scalar_lea.hbm %s984_s11, 256  ;;  %s745_s10 = scalar_lea.hbm %s1038_s3, 512 }
 0x137   : > { %p742_p4 = scmp.ne.s32.totalorder %s984_s11, %s741_s6  ;;  %p746_p12 = scmp.lt.u32.totalorder %s984_s11, %s1038_s3 }
 0x138   : > { %p747_p2 = scmp.lt.u32.totalorder %s745_s10, %s741_s6  ;;  %p749_p8 = scmp.lt.u32.totalorder %s741_s6, %s984_s11 }
 0x139   : > { %p743_p6 = pnand %p742_p4, %p1045_p9 }
 0x13a   : > { %p748_p5 = por %p747_p2, %p746_p12 }
 0x13b   : > { %p744_p7 = pneg %p743_p6 }
 0x13c   : > { %p750_p11 = por %p749_p8, %p748_p5 }
 0x13e   : > { %p751_p0 = pnand %p750_p11, %p744_p7 }
 0x140   : > { %754 = shalt.err (!%p751_p0)
}
 0x141   : > { %s819_s29 = smov 128   ;;  %s820_s30 = smov 256  }
 0x142   : > { %s821_s5 = smov 8  }
 0x143   : > { %614 = dma.vmem_to_hbm [thread:$0]  (%p1045_p9), %s986_s4, 256, %s984_s11, %s423_s15, %s819_s29, %s820_s30, %s821_s5  }
 0x144 PF: > { %s453_s7 = sand.u32 1, %s789_s12   ;;  %p1046_p10 = scmp.ne.s32.totalorder %s1043_s27, 0 }
 0x145   : > { %p1047_p13 = scmp.ge.s32.totalorder %s809_s17, 2  ;;  %s454_s19 = scalar_lea.sflag [#allocation4], %s453_s7 }
 0x147   : > { %p621_p1 = pnand %p1047_p13, %p1046_p10 }
 0x149   : > { %784 = dma.done.wait (!%p621_p1), %s454_s19, 256  }
 0x14a   : > { %786 = vsyncadd (!%p621_p1), %s454_s19, 4294967040  ;;  %s19_s17 = sadd.s32 1, %s809_s17   ;;  %s1048_s12 = smov %s793_s13 }
 0x14b   : > { %p16_p3 = scmp.ge.s32.totalorder %s19_s17, 4   ;;  %s1049_s13 = smov %s797_s14 }
 0x14c   : > { %s1050_s14 = smov %s898_s26  ;;  %s1051_s15 = smov %s805_s16 }
 0x14d   : > { %s1052_s16 = smov %s1054_s20  ;;  %18 = sbr.rel (!%p16_p3) target bundleno = 6 (0x6), region = 91 }
 0x154   :  { %459 = vsyncpa [#allocation3], 1 }
 0x155   :  { %461 = vsyncpa [#allocation3 + $0x1], 1 }
 0x156   :  { %462 = vsyncpa [#allocation4], 1 }
 0x157   :  { %464 = vsyncpa [#allocation4 + $0x1], 1 }

</bundles_post_ra>
